<compile_context>
chip_gen: v5e
topology: v5e:2x2
jax: 0.10.0
libtpu: 0.0.40
codegen_flags: <defaults>
</compile_context>

<pallas_src>
import functools
import math

import jax
import jax.numpy as jnp
from jax.experimental import pallas as pl
from jax.experimental.pallas import tpu as pltpu

EMB_DIM = 128            # fixed by the module: weight is Parameter(class_num, 128)
_MAX_TB = 2048           # batch-tile cap before VMEM budgeting
_MAX_TC = 2048           # class-tile cap (lane-dense, multiple of 128)
_VMEM_BUDGET = 24 * 1024 * 1024   # keep 2x-buffered tiles under v7x's 32 MiB scoped default


def _round_up(x, n):
    return (x + n - 1) // n * n


def _pick_class_tile(class_num):
    return max(128, min(_MAX_TC, _round_up(class_num, 128)))


def _pick_batch_tile(b, tc, in_itemsize, out_itemsize):
    tb = min(_MAX_TB, _round_up(b, 16))   # multiple of 16 for bf16 sublane packing

    def vmem_bytes(tb_):
        # double-buffered: output tile + weight tile + x tile + labels
        return 2 * (tb_ * tc * out_itemsize
                    + tc * EMB_DIM * in_itemsize
                    + tb_ * EMB_DIM * in_itemsize
                    + tb_ * 4)

    while tb > 16 and vmem_bytes(tb) > _VMEM_BUDGET:
        tb = max(16, _round_up(tb // 2, 16))
    return tb


def arcloss_kernel(flags_ref, x_ref, w_ref, label_ref, o_ref, *,
                   cos_m, sin_m, th, mm, s, easy_margin):
    # flags_ref: [n_bt, n_ct] int32 in SMEM (scalar prefetch) - per-tile
    #            "this class tile contains some row's target column" flag.
    # x_ref:     [TB, 128]  raw embeddings (compute dtype)
    # w_ref:     [TC, 128]  raw class weights, natural [class, 128] layout
    # label_ref: [TB, 1]    int32 target class per row
    # o_ref:     [TB, TC]   scaled logits
    i = pl.program_id(0)
    j = pl.program_id(1)
    tb, tc = o_ref.shape

    # Fused L2 normalization (full D=128 resident in the block).  Squares /
    # sums / rsqrt in f32, MXU is fed at the streaming dtype.
    x = x_ref[...]
    w = w_ref[...]
    xf = x.astype(jnp.float32)
    wf = w.astype(jnp.float32)
    xn = (xf * jax.lax.rsqrt(jnp.sum(xf * xf, axis=1, keepdims=True) + 1e-12)
          ).astype(x.dtype)
    wn = (wf * jax.lax.rsqrt(jnp.sum(wf * wf, axis=1, keepdims=True) + 1e-12)
          ).astype(w.dtype)

    # cosine = xn @ wn.T   (contract the embedding dim of both operands).
    cosine = jax.lax.dot_general(
        xn, wn, dimension_numbers=(((1,), (1,)), ((), ())),
        preferred_element_type=jnp.float32)                 # [tb, tc] f32

    flag = flags_ref[i, j]

    @pl.when(flag == 0)
    def _():
        # No target column falls in this tile: logits are just s * cosine.
        o_ref[...] = (cosine * s).astype(o_ref.dtype)

    @pl.when(flag != 0)
    def _():
        # ArcFace margin (dense) + one-hot select without materializing
        # one_hot: compare each column's global class index with the row label.
        sine = jnp.sqrt(jnp.maximum(1.0 - cosine * cosine, 0.0))
        phi = cosine * cos_m - sine * sin_m
        if easy_margin:
            phi = jnp.where(cosine > 0, phi, cosine)
        else:
            phi = jnp.where(cosine - th > 0, phi, cosine - mm)
        col = jax.lax.broadcasted_iota(jnp.int32, (tb, tc), 1) + j * tc
        is_target = col == label_ref[...]                   # [tb,1] broadcast
        o_ref[...] = (jnp.where(is_target, phi, cosine) * s).astype(o_ref.dtype)


def prepare_weight(weight, compute_dtype=jnp.bfloat16, class_tile=None):
    """One-time preparation of the (Parameter) weight OUTSIDE the hot path:
    cast to the MXU streaming dtype and pad the class dim to a tile multiple,
    so the per-call forward does no large copies."""
    c, d = weight.shape
    assert d == EMB_DIM, (c, d)
    tc = class_tile if class_tile is not None else _pick_class_tile(c)
    assert tc % 128 == 0
    c_pad = _round_up(c, tc)
    w = weight.astype(compute_dtype)
    if c_pad != c:
        w = jnp.pad(w, ((0, c_pad - c), (0, 0)))
    return w


@functools.partial(
    jax.jit,
    static_argnames=("class_num", "s", "m", "easy_margin", "out_dtype", "class_tile"))
def arcloss_forward(x, label, weight_prepared, *, class_num, s=32.0, m=0.5,
                    easy_margin=False, out_dtype=jnp.float32, class_tile=None):
    """x: [B, 128]  label: [B] int  weight_prepared: [c_pad, 128] (prepare_weight)
    -> [B, class_num] scaled ArcFace logits."""
    b, d = x.shape
    c_pad, dw = weight_prepared.shape
    assert d == EMB_DIM and dw == EMB_DIM, (x.shape, weight_prepared.shape)
    assert c_pad % 128 == 0 and c_pad >= class_num

    compute_dtype = weight_prepared.dtype
    in_itemsize = jnp.dtype(compute_dtype).itemsize
    out_itemsize = jnp.dtype(out_dtype).itemsize

    tc = class_tile if class_tile is not None else min(_MAX_TC, c_pad)
    assert tc % 128 == 0 and c_pad % tc == 0, (c_pad, tc)
    tb = _pick_batch_tile(b, tc, in_itemsize, out_itemsize)
    b_pad = _round_up(b, tb)
    n_bt, n_ct = b_pad // tb, c_pad // tc

    cos_m, sin_m = math.cos(m), math.sin(m)
    th = math.cos(math.pi - m)
    mm = math.sin(math.pi - m) * m

    lab = label.astype(jnp.int32)
    # Per-(batch tile, class tile) "contains a target" flag; O(B) to build,
    # lives in SMEM via scalar prefetch so target-free tiles skip margin math.
    flags = jnp.zeros((n_bt, n_ct), jnp.int32).at[
        jnp.arange(b) // tb, lab // tc].set(1, mode="drop")

    xp = x.astype(compute_dtype)
    if b_pad != b:
        xp = jnp.pad(xp, ((0, b_pad - b), (0, 0)))
        lab = jnp.pad(lab, (0, b_pad - b), constant_values=c_pad)  # never matches
    labp = lab.reshape(b_pad, 1)

    kernel = functools.partial(
        arcloss_kernel, cos_m=cos_m, sin_m=sin_m, th=th, mm=mm,
        s=float(s), easy_margin=bool(easy_margin))

    out = pl.pallas_call(
        kernel,
        out_shape=jax.ShapeDtypeStruct((b_pad, c_pad), out_dtype),
        grid_spec=pltpu.PrefetchScalarGridSpec(
            num_scalar_prefetch=1,
            grid=(n_bt, n_ct),
            in_specs=[
                pl.BlockSpec((tb, EMB_DIM), lambda i, j, fl: (i, 0)),  # x tile
                pl.BlockSpec((tc, EMB_DIM), lambda i, j, fl: (j, 0)),  # W tile
                pl.BlockSpec((tb, 1), lambda i, j, fl: (i, 0)),        # labels
            ],
            out_specs=pl.BlockSpec((tb, tc), lambda i, j, fl: (i, j)),
        ),
        compiler_params=pltpu.CompilerParams(
            dimension_semantics=("parallel", "parallel")),
    )(flags, xp, weight_prepared, labp)

    if b_pad != b or c_pad != class_num:
        out = out[:b, :class_num]
    return out


def arcloss(x, label, weight, *, s=32.0, m=0.5, easy_margin=False,
            compute_dtype=jnp.float32, out_dtype=jnp.float32, class_tile=None):
    """Convenience one-shot wrapper (prepares the weight every call)."""
    wp = prepare_weight(weight, compute_dtype, class_tile)
    return arcloss_forward(x, label, wp, class_num=weight.shape[0], s=s, m=m,
                           easy_margin=easy_margin, out_dtype=out_dtype,
                           class_tile=class_tile)


def ref_arcloss(x, label, weight, *, s=32.0, m=0.5, easy_margin=False):
    xn = x / jnp.maximum(jnp.linalg.norm(x, axis=1, keepdims=True), 1e-12)
    wn = weight / jnp.maximum(jnp.linalg.norm(weight, axis=1, keepdims=True), 1e-12)
    cosine = xn @ wn.T
    sine = jnp.sqrt(jnp.maximum(1.0 - cosine ** 2, 0.0))
    phi = cosine * math.cos(m) - sine * math.sin(m)
    if easy_margin:
        phi = jnp.where(cosine > 0, phi, cosine)
    else:
        th = math.cos(math.pi - m)
        mm = math.sin(math.pi - m) * m
        phi = jnp.where(cosine - th > 0, phi, cosine - mm)
    one_hot = jax.nn.one_hot(label, weight.shape[0], dtype=cosine.dtype)
    return (one_hot * phi + (1.0 - one_hot) * cosine) * s


if __name__ == "__main__":
    key = jax.random.PRNGKey(0)

    # --- Test 1: Arcloss(class_num=256, s=32, m=0.5), f32 streams (bit-faithful)
    B, CLASSES = 8, 256
    kx, kw, kl = jax.random.split(key, 3)
    x = jax.random.normal(kx, (B, EMB_DIM), dtype=jnp.float32)
    std = math.sqrt(2.0 / (CLASSES + EMB_DIM))               # xavier_normal_
    weight = std * jax.random.normal(kw, (CLASSES, EMB_DIM), dtype=jnp.float32)
    label = jax.random.randint(kl, (B,), 0, CLASSES, dtype=jnp.int32)

    w_f32 = prepare_weight(weight, compute_dtype=jnp.float32)
    out = jax.block_until_ready(
        arcloss_forward(x, label, w_f32, class_num=CLASSES,
                        s=32.0, m=0.5, easy_margin=False))
    ref = ref_arcloss(x, label, weight, s=32.0, m=0.5, easy_margin=False)
    assert out.shape == (B, CLASSES), out.shape
    err = float(jnp.max(jnp.abs(out - ref)))
    assert jnp.allclose(out, ref, atol=1e-3, rtol=1e-3), err

    # --- Test 2: multiple class tiles so both the gated (target) tile path and
    #             the fast target-free path are exercised.
    C2 = 512
    kx2, kw2, kl2 = jax.random.split(jax.random.PRNGKey(1), 3)
    x2 = jax.random.normal(kx2, (B, EMB_DIM), dtype=jnp.float32)
    w2 = math.sqrt(2.0 / (C2 + EMB_DIM)) * jax.random.normal(
        kw2, (C2, EMB_DIM), dtype=jnp.float32)
    lab2 = jax.random.randint(kl2, (B,), 0, C2, dtype=jnp.int32)
    w2_p = prepare_weight(w2, compute_dtype=jnp.float32, class_tile=128)
    out2 = jax.block_until_ready(
        arcloss_forward(x2, lab2, w2_p, class_num=C2, class_tile=128))
    ref2 = ref_arcloss(x2, lab2, w2)
    err2 = float(jnp.max(jnp.abs(out2 - ref2)))
    assert jnp.allclose(out2, ref2, atol=1e-3, rtol=1e-3), err2

    # --- Test 3: bf16 input streams (default prepare dtype) -> looser tolerance.
    w_bf16 = prepare_weight(weight, compute_dtype=jnp.bfloat16)
    out_bf = jax.block_until_ready(
        arcloss_forward(x, label, w_bf16, class_num=CLASSES))
    err_bf = float(jnp.max(jnp.abs(out_bf - ref)))
    assert jnp.allclose(out_bf, ref, atol=0.5, rtol=0.05), err_bf

    print("KERNEL_OK")
</pallas_src>

<mosaic_0001>
module attributes {stable_mosaic.version = 11 : i64} {
  func.func @arcloss_kernel(%arg0: i32, %arg1: i32, %arg2: memref<1x1xi32, #tpu.memory_space<smem>>, %arg3: memref<16x128xf32, #tpu.memory_space<vmem>>, %arg4: memref<256x128xf32, #tpu.memory_space<vmem>>, %arg5: memref<16x1xi32, #tpu.memory_space<vmem>>, %arg6: memref<16x256xf32, #tpu.memory_space<vmem>>) attributes {dimension_semantics = [#tpu.dimension_semantics<parallel>, #tpu.dimension_semantics<parallel>], iteration_bounds = array<i64: 1, 1>, scalar_prefetch = 1 : i64, scratch_operands = 0 : i64, tpu.core_type = #tpu.core_type<tc>, window_params = [{transform_indices = @transform_0, window_bounds = array<i64: 16, 128>}, {transform_indices = @transform_1, window_bounds = array<i64: 256, 128>}, {transform_indices = @transform_2, window_bounds = array<i64: 16, 1>}, {transform_indices = @transform_3, window_bounds = array<i64: 16, 256>}]} {
    %c0 = arith.constant 0 : index
    %c0_0 = arith.constant 0 : index
    %0 = vector.load %arg3[%c0, %c0_0] : memref<16x128xf32, #tpu.memory_space<vmem>>, vector<16x128xf32>
    %c0_1 = arith.constant 0 : index
    %c0_2 = arith.constant 0 : index
    %1 = vector.load %arg4[%c0_1, %c0_2] : memref<256x128xf32, #tpu.memory_space<vmem>>, vector<256x128xf32>
    %2 = arith.mulf %0, %0 : vector<16x128xf32>
    %cst = arith.constant dense<0.000000e+00> : vector<16xf32>
    %3 = vector.multi_reduction <add>, %2, %cst [1] : vector<16x128xf32> to vector<16xf32>
    %4 = vector.shape_cast %3 : vector<16xf32> to vector<16x1xf32>
    %cst_3 = arith.constant 9.99999996E-13 : f32
    %5 = vector.broadcast %cst_3 : f32 to vector<16x1xf32>
    %6 = arith.addf %4, %5 : vector<16x1xf32>
    %7 = math.rsqrt %6 : vector<16x1xf32>
    %8 = vector.broadcast %7 : vector<16x1xf32> to vector<16x128xf32>
    %9 = arith.mulf %0, %8 : vector<16x128xf32>
    %10 = arith.mulf %1, %1 : vector<256x128xf32>
    %cst_4 = arith.constant dense<0.000000e+00> : vector<256xf32>
    %11 = vector.multi_reduction <add>, %10, %cst_4 [1] : vector<256x128xf32> to vector<256xf32>
    %12 = vector.shape_cast %11 : vector<256xf32> to vector<256x1xf32>
    %cst_5 = arith.constant 9.99999996E-13 : f32
    %13 = vector.broadcast %cst_5 : f32 to vector<256x1xf32>
    %14 = arith.addf %12, %13 : vector<256x1xf32>
    %15 = math.rsqrt %14 : vector<256x1xf32>
    %16 = vector.broadcast %15 : vector<256x1xf32> to vector<256x128xf32>
    %17 = arith.mulf %1, %16 : vector<256x128xf32>
    %cst_6 = arith.constant dense<0.000000e+00> : vector<16x256xf32>
    %18 = tpu.matmul %9, %17, %cst_6 {dimension_numbers = #tpu.dot_dimension_numbers<[1], [1], [0], [0], [0, 0, 1, 0], [], []>} : vector<16x128xf32>, vector<256x128xf32>, vector<16x256xf32> -> vector<16x256xf32>
    %19 = arith.index_cast %arg0 : i32 to index
    %20 = arith.index_cast %arg1 : i32 to index
    %21 = memref.load %arg2[%19, %20] : memref<1x1xi32, #tpu.memory_space<smem>>
    %c0_i32 = arith.constant 0 : i32
    %22 = arith.cmpi eq, %21, %c0_i32 : i32
    %23 = arith.extui %22 : i1 to i32
    %c0_i32_7 = arith.constant 0 : i32
    %24 = arith.cmpi ne, %23, %c0_i32_7 : i32
    scf.if %24 {
      %cst_10 = arith.constant 3.200000e+01 : f32
      %28 = vector.broadcast %cst_10 : f32 to vector<16x256xf32>
      %29 = arith.mulf %18, %28 : vector<16x256xf32>
      %c0_11 = arith.constant 0 : index
      %c0_12 = arith.constant 0 : index
      %30 = vector.load %arg6[%c0_11, %c0_12] : memref<16x256xf32, #tpu.memory_space<vmem>>, vector<16x256xf32>
      tpu.vector_store %arg6[%c0_11, %c0_12], %29 {strides = array<i32>} : memref<16x256xf32, #tpu.memory_space<vmem>>, vector<16x256xf32>,
    } else {
    }
    %c0_i32_8 = arith.constant 0 : i32
    %25 = arith.cmpi ne, %21, %c0_i32_8 : i32
    %26 = arith.extui %25 : i1 to i32
    %c0_i32_9 = arith.constant 0 : i32
    %27 = arith.cmpi ne, %26, %c0_i32_9 : i32
    scf.if %27 {
      %28 = arith.mulf %18, %18 : vector<16x256xf32>
      %cst_10 = arith.constant 1.000000e+00 : f32
      %29 = vector.broadcast %cst_10 : f32 to vector<16x256xf32>
      %30 = arith.subf %29, %28 : vector<16x256xf32>
      %cst_11 = arith.constant 0.000000e+00 : f32
      %31 = vector.broadcast %cst_11 : f32 to vector<16x256xf32>
      %32 = arith.maximumf %30, %31 : vector<16x256xf32>
      %33 = math.sqrt %32 : vector<16x256xf32>
      %cst_12 = arith.constant 0.87758255 : f32
      %34 = vector.broadcast %cst_12 : f32 to vector<16x256xf32>
      %35 = arith.mulf %18, %34 : vector<16x256xf32>
      %cst_13 = arith.constant 0.47942555 : f32
      %36 = vector.broadcast %cst_13 : f32 to vector<16x256xf32>
      %37 = arith.mulf %33, %36 : vector<16x256xf32>
      %38 = arith.subf %35, %37 : vector<16x256xf32>
      %cst_14 = arith.constant -0.87758255 : f32
      %39 = vector.broadcast %cst_14 : f32 to vector<16x256xf32>
      %40 = arith.subf %18, %39 : vector<16x256xf32>
      %cst_15 = arith.constant 0.000000e+00 : f32
      %41 = vector.broadcast %cst_15 : f32 to vector<16x256xf32>
      %42 = arith.cmpf ogt, %40, %41 : vector<16x256xf32>
      %cst_16 = arith.constant 0.239712775 : f32
      %43 = vector.broadcast %cst_16 : f32 to vector<16x256xf32>
      %44 = arith.subf %18, %43 : vector<16x256xf32>
      %45 = arith.select %42, %38, %44 : vector<16x256xi1>, vector<16x256xf32>
      %46 = tpu.iota {dimensions = array<i32: 1>} : vector<16x256xi32>
      %c256_i32 = arith.constant 256 : i32
      %47 = arith.muli %arg1, %c256_i32 : i32
      %48 = vector.broadcast %47 : i32 to vector<16x256xi32>
      %49 = arith.addi %46, %48 : vector<16x256xi32>
      %c0_17 = arith.constant 0 : index
      %c0_18 = arith.constant 0 : index
      %50 = vector.load %arg5[%c0_17, %c0_18] : memref<16x1xi32, #tpu.memory_space<vmem>>, vector<16x1xi32>
      %51 = vector.broadcast %50 : vector<16x1xi32> to vector<16x256xi32>
      %52 = arith.cmpi eq, %49, %51 : vector<16x256xi32>
      %53 = arith.select %52, %45, %18 : vector<16x256xi1>, vector<16x256xf32>
      %cst_19 = arith.constant 3.200000e+01 : f32
      %54 = vector.broadcast %cst_19 : f32 to vector<16x256xf32>
      %55 = arith.mulf %53, %54 : vector<16x256xf32>
      %c0_20 = arith.constant 0 : index
      %c0_21 = arith.constant 0 : index
      %56 = vector.load %arg6[%c0_20, %c0_21] : memref<16x256xf32, #tpu.memory_space<vmem>>, vector<16x256xf32>
      tpu.vector_store %arg6[%c0_20, %c0_21], %55 {strides = array<i32>} : memref<16x256xf32, #tpu.memory_space<vmem>>, vector<16x256xf32>,
    } else {
    }
    return
  }
  func.func @transform_0(%arg0: i32, %arg1: i32, %arg2: memref<1x1xi32, #tpu.memory_space<smem>>) -> (i32, i32) {
    %c0_i32 = arith.constant 0 : i32
    %c0_i32_0 = arith.constant 0 : i32
    return %arg0, %c0_i32 : i32, i32
  }
  func.func @transform_1(%arg0: i32, %arg1: i32, %arg2: memref<1x1xi32, #tpu.memory_space<smem>>) -> (i32, i32) {
    %c0_i32 = arith.constant 0 : i32
    %c0_i32_0 = arith.constant 0 : i32
    return %arg1, %c0_i32 : i32, i32
  }
  func.func @transform_2(%arg0: i32, %arg1: i32, %arg2: memref<1x1xi32, #tpu.memory_space<smem>>) -> (i32, i32) {
    %c0_i32 = arith.constant 0 : i32
    %c0_i32_0 = arith.constant 0 : i32
    return %arg0, %c0_i32 : i32, i32
  }
  func.func @transform_3(%arg0: i32, %arg1: i32, %arg2: memref<1x1xi32, #tpu.memory_space<smem>>) -> (i32, i32) {
    %c0_i32 = arith.constant 0 : i32
    return %arg0, %arg1 : i32, i32
  }
}

</mosaic_0001>

<bundles_post_ra>
// kernel: ne.6
= control target key start
LH: loop header
LB: loop body
LE: loop exit
PB: predicated region body
PF: predicated region fallthrough
CT: control target
= control target key end

     0   :  { %s20_s0 = inlined_call_operand.<no memory space> [shape: s32[], index: 0, kind: input, shape index: {}]   ;;  %s21_s1 = inlined_call_operand.vmem [shape: s32[8], index: 1, kind: output, shape index: {}]  }
   0x1   :  { %v2_v0 = vstv %s20_s0 }
   0x2   :  { %3 = vst [vmem:[%s21_s1] sm:$0x1] %v2_v0 }

// kernel: arcloss_forward.1
= control target key start
LH: loop header
LB: loop body
LE: loop exit
PB: predicated region body
PF: predicated region fallthrough
CT: control target
= control target key end

     0   :  { %s1774_s2 = inlined_call_operand.vmem [shape: f32[256,128], index: 2, kind: input, shape index: {}]   ;;  %s1775_s0 = inlined_call_operand.<no memory space> [shape: s32[1,1], index: 0, kind: input, shape index: {}]   ;;  %s1776_s3 = inlined_call_operand.vmem [shape: s32[16,1], index: 3, kind: input, shape index: {}]   ;;  %s1777_s4 = inlined_call_operand.vmem [shape: f32[16,256], index: 4, kind: output, shape index: {}]   ;;  %s1778_s1 = inlined_call_operand.vmem [shape: f32[16,128], index: 1, kind: input, shape index: {}]  }
   0x1   :  { %v904_v0 = vld [vmem:[%s1774_s2 + $0x78] sm:$0xff]  ;;  %v909_v1 = vld [vmem:[%s1774_s2 + $0x70] sm:$0xff]  ;;  %v914_v2 = vld [vmem:[%s1774_s2 + $0x68] sm:$0xff]  ;;  %p749_p0 = scmp.ne.s32.totalorder %s1775_s0, 0 }
   0x2   :  { %v95_v3 = vmul.f32 %v904_v0, %v904_v0  ;;  %v94_v4 = vmul.f32 %v909_v1, %v909_v1  ;;  %v93_v5 = vmul.f32 %v914_v2, %v914_v2  ;;  %v925_v6 = vld [vmem:[%s1774_s2 + $0xf8] sm:$0xff]  ;;  %v930_v7 = vld [vmem:[%s1774_s2 + $0xf0] sm:$0xff]  ;;  %v935_v8 = vld [vmem:[%s1774_s2 + $0xe8] sm:$0xff] }
   0x3   :  { %v111_v9 = vmul.f32 %v925_v6, %v925_v6  ;;  %v110_v10 = vmul.f32 %v930_v7, %v930_v7  ;;  %v109_v11 = vmul.f32 %v935_v8, %v935_v8  ;;  %v946_v12 = vld [vmem:[%s1774_s2 + $0xe0] sm:$0xff]  ;;  %v956_v14 = vld [vmem:[%s1774_s2 + $0x58] sm:$0xff]  ;;  %v972_v19 = vld [vmem:[%s1774_s2 + $0x50] sm:$0xff] }
   0x4   :  { %142 = vadd.xlane.f32.xlu0 %v95_v3  ;;  %140 = vadd.xlane.f32.xlu1 %v94_v4  ;;  %v951_v13 = vld [vmem:[%s1774_s2 + $0x60] sm:$0xff]  ;;  %v108_v15 = vmul.f32 %v946_v12, %v946_v12  ;;  %v91_v17 = vmul.f32 %v956_v14, %v956_v14  ;;  %v967_v18 = vld [vmem:[%s1774_s2 + $0xd8] sm:$0xff]  ;;  %v977_v20 = vld [vmem:[%s1774_s2 + $0xd0] sm:$0xff]  ;;  %v90_v22 = vmul.f32 %v972_v19, %v972_v19 }
   0x5   :  { %138 = vadd.xlane.f32.xlu2 %v93_v5  ;;  %v92_v16 = vmul.f32 %v951_v13, %v951_v13  ;;  %v107_v21 = vmul.f32 %v967_v18, %v967_v18  ;;  %v106_v23 = vmul.f32 %v977_v20, %v977_v20  ;;  %v988_v24 = vld [vmem:[%s1774_s2 + $0xc8] sm:$0xff]  ;;  %v998_v26 = vld [vmem:[%s1774_s2 + $0x40] sm:$0xff]  ;;  %v1014_v31 = vld [vmem:[%s1774_s2 + $0x38] sm:$0xff] }
   0x6   :  { %v993_v25 = vld [vmem:[%s1774_s2 + $0x48] sm:$0xff]  ;;  %v105_v27 = vmul.f32 %v988_v24, %v988_v24  ;;  %v88_v29 = vmul.f32 %v998_v26, %v998_v26  ;;  %v1009_v30 = vld [vmem:[%s1774_s2 + $0xc0] sm:$0xff]  ;;  %v1019_v32 = vld [vmem:[%s1774_s2 + $0xb8] sm:$0xff]  ;;  %v87_v34 = vmul.f32 %v1014_v31, %v1014_v31 }
   0x7   :  { %v89_v28 = vmul.f32 %v993_v25, %v993_v25  ;;  %v104_v33 = vmul.f32 %v1009_v30, %v1009_v30  ;;  %v103_v35 = vmul.f32 %v1019_v32, %v1019_v32  ;;  %v1030_v36 = vld [vmem:[%s1774_s2 + $0xb0] sm:$0xff]  ;;  %v1040_v38 = vld [vmem:[%s1774_s2 + $0x28] sm:$0xff]  ;;  %v1056_v43 = vld [vmem:[%s1774_s2 + $0x20] sm:$0xff] }
   0x8   :  { %v1035_v37 = vld [vmem:[%s1774_s2 + $0x30] sm:$0xff]  ;;  %v102_v39 = vmul.f32 %v1030_v36, %v1030_v36  ;;  %v85_v41 = vmul.f32 %v1040_v38, %v1040_v38  ;;  %v1051_v42 = vld [vmem:[%s1774_s2 + $0xa8] sm:$0xff]  ;;  %v1061_v44 = vld [vmem:[%s1774_s2 + $0xa0] sm:$0xff]  ;;  %v84_v46 = vmul.f32 %v1056_v43, %v1056_v43 }
   0x9   :  { %v86_v40 = vmul.f32 %v1035_v37, %v1035_v37  ;;  %v101_v45 = vmul.f32 %v1051_v42, %v1051_v42  ;;  %v100_v47 = vmul.f32 %v1061_v44, %v1061_v44  ;;  %v1072_v48 = vld [vmem:[%s1774_s2 + $0x98] sm:$0xff]  ;;  %v1082_v50 = vld [vmem:[%s1774_s2 + $0x10] sm:$0xff]  ;;  %v1096_v55 = vld [vmem:[%s1774_s2 + $0x8] sm:$0xff] }
   0xa   :  { %v1077_v49 = vld [vmem:[%s1774_s2 + $0x18] sm:$0xff]  ;;  %v99_v51 = vmul.f32 %v1072_v48, %v1072_v48  ;;  %v82_v53 = vmul.f32 %v1082_v50, %v1082_v50  ;;  %v36_v54 = vld [vmem:[%s1774_s2 + $0x90] sm:$0xff]  ;;  %v35_v56 = vld [vmem:[%s1774_s2 + $0x88] sm:$0xff]  ;;  %v81_v58 = vmul.f32 %v1096_v55, %v1096_v55 }
   0xb   :  { %v83_v52 = vmul.f32 %v1077_v49, %v1077_v49  ;;  %v98_v57 = vmul.f32 %v36_v54, %v36_v54  ;;  %v97_v59 = vmul.f32 %v35_v56, %v35_v56  ;;  %v34_v60 = vld [vmem:[%s1774_s2 + $0x80] sm:$0xff]  ;;  %v17_v62 = vld [vmem:[%s1778_s1 + $0x8] sm:$0xff] }
   0xc   :  { %174 = vadd.xlane.f32.xlu0 %v111_v9  ;;  %172 = vadd.xlane.f32.xlu1 %v110_v10  ;;  %v18_v61 = vld [vmem:[%s1774_s2] sm:$0xff]  ;;  %v96_v63 = vmul.f32 %v34_v60, %v34_v60  ;;  %v51_v4 = vmul.f32 %v17_v62, %v17_v62 }
   0xd   :  { %170 = vadd.xlane.f32.xlu2 %v109_v11  ;;  %v80_v3 = vmul.f32 %v18_v61, %v18_v61  ;;  %v16_v5 = vld [vmem:[%s1778_s1] sm:$0xff] }
   0xe   :  { %v50_v9 = vmul.f32 %v16_v5, %v16_v5 }
  0x14   :  { %168 = vadd.xlane.f32.xlu1 %v108_v15  ;;  %136 = vadd.xlane.f32.xlu0 %v92_v16 }
  0x15   :  { %134 = vadd.xlane.f32.xlu2 %v91_v17 }
  0x1c   :  { %166 = vadd.xlane.f32.xlu0 %v107_v21  ;;  %132 = vadd.xlane.f32.xlu1 %v90_v22 }
  0x1d   :  { %164 = vadd.xlane.f32.xlu2 %v106_v23 }
  0x24   :  { %162 = vadd.xlane.f32.xlu1 %v105_v27  ;;  %130 = vadd.xlane.f32.xlu0 %v89_v28 }
  0x25   :  { %128 = vadd.xlane.f32.xlu2 %v88_v29 }
  0x2c   :  { %160 = vadd.xlane.f32.xlu0 %v104_v33  ;;  %126 = vadd.xlane.f32.xlu1 %v87_v34 }
  0x2d   :  { %158 = vadd.xlane.f32.xlu2 %v103_v35 }
  0x34   :  { %156 = vadd.xlane.f32.xlu1 %v102_v39  ;;  %124 = vadd.xlane.f32.xlu0 %v86_v40 }
  0x35   :  { %122 = vadd.xlane.f32.xlu2 %v85_v41 }
  0x3c   :  { %154 = vadd.xlane.f32.xlu0 %v101_v45  ;;  %120 = vadd.xlane.f32.xlu1 %v84_v46 }
  0x3d   :  { %152 = vadd.xlane.f32.xlu2 %v100_v47 }
  0x44   :  { %150 = vadd.xlane.f32.xlu1 %v99_v51  ;;  %118 = vadd.xlane.f32.xlu0 %v83_v52 }
  0x45   :  { %116 = vadd.xlane.f32.xlu2 %v82_v53 }
  0x4c   :  { %148 = vadd.xlane.f32.xlu0 %v98_v57  ;;  %114 = vadd.xlane.f32.xlu1 %v81_v58 }
  0x4d   :  { %146 = vadd.xlane.f32.xlu2 %v97_v59 }
  0x54   :  { %144 = vadd.xlane.f32.xlu1 %v96_v63  ;;  %112 = vadd.xlane.f32.xlu0 %v80_v3 }
  0x55   :  { %54 = vadd.xlane.f32.xlu2 %v51_v4 }
  0x5c   :  { %52 = vadd.xlane.f32.xlu0 %v50_v9 }
  0x77   :  { %v143_v10 = vpop.xlane.xlu0 %142  ;;  %v141_v11 = vpop.xlane.xlu1 %140 }
  0x78   :  { %v191_v15 = vadd.f32 1e-12, %v143_v10  ;;  %v190_v16 = vadd.f32 1e-12, %v141_v11  ;;  %v139_v17 = vpop.xlane.xlu2 %138 }
  0x79   :  { %v1115_v21 = vadd.f32 1e-12, %v139_v17 }
  0x7a   :  { %792 = vrsqrt.f32 %v191_v15  ;;  %vm364_vm1 = vweird.f32 %v191_v15  ;;  %vm354_vm3 = vweird.f32 %v190_v16 }
  0x7b   :  { %794 = vrsqrt.f32 %v190_v16  ;;  %vm344_vm5 = vweird.f32 %v1115_v21 }
  0x7c   :  { %796 = vrsqrt.f32 %v1115_v21 }
  0x7f   :  { %v175_v22 = vpop.xlane.xlu0 %174  ;;  %v173_v23 = vpop.xlane.xlu1 %172 }
  0x80   :  { %v793_v27 = vpop.eup %792  ;;  %v1118_v28 = vadd.f32 1e-12, %v175_v22  ;;  %v1120_v29 = vadd.f32 1e-12, %v173_v23  ;;  %v171_v33 = vpop.xlane.xlu2 %170 }
  0x81   :  { %v1122_v34 = vpop.eup %794  ;;  %v359_v35 = vmul.f32 %v793_v27, %v191_v15  ;;  %v1124_v39 = vadd.f32 1e-12, %v171_v33  ;;  %vm365_vm0 = vweird.f32 %v793_v27 }
  0x82   :  { %v1126_v40 = vpop.eup %796  ;;  %v349_v41 = vmul.f32 %v1122_v34, %v190_v16  ;;  %798 = vrsqrt.f32 %v1118_v28  ;;  %vm355_vm2 = vweird.f32 %v1122_v34  ;;  %vm366_vm4 = vmor %vm364_vm1, %vm365_vm0  ;;  %vm524_vm8 = vweird.f32 %v1118_v28 }
  0x83   :  { %v360_v45 = vmul.f32 %v793_v27, %v359_v35  ;;  %v339_v46 = vmul.f32 %v1126_v40, %v1115_v21  ;;  %800 = vrsqrt.f32 %v1120_v29  ;;  %vm1165_vm6 = vmor %vm354_vm3, %vm355_vm2  ;;  %vm345_vm7 = vweird.f32 %v1126_v40 }
  0x84   :  { %v350_v47 = vmul.f32 %v1122_v34, %v349_v41  ;;  %802 = vrsqrt.f32 %v1124_v39  ;;  %vm514_vm9 = vweird.f32 %v1120_v29  ;;  %vm504_vm11 = vweird.f32 %v1124_v39  ;;  %vm1195_vm12 = vmor %vm344_vm5, %vm345_vm7 }
  0x85   :  { %v361_v51 = vmul.f32 0.5, %v360_v45  ;;  %v340_v52 = vmul.f32 %v1126_v40, %v339_v46 }
  0x86   :  { %v351_v53 = vmul.f32 0.5, %v350_v47 }
  0x87   :  { %v362_v54 = vsub.f32 1.5, %v361_v51  ;;  %v341_v56 = vmul.f32 0.5, %v340_v52  ;;  %v169_v57 = vpop.xlane.xlu1 %168  ;;  %v137_v58 = vpop.xlane.xlu0 %136 }
  0x88   :  { %v1136_v59 = vpop.eup %798  ;;  %v352_v60 = vsub.f32 1.5, %v351_v53  ;;  %v1138_v61 = vadd.f32 1e-12, %v169_v57  ;;  %v1140_v62 = vadd.f32 1e-12, %v137_v58  ;;  %v135_v63 = vpop.xlane.xlu2 %134 }
  0x89   :  { %v1142_v3 = vpop.eup %800  ;;  %v519_v4 = vmul.f32 %v1136_v59, %v1118_v28  ;;  %v1146_v5 = vadd.f32 1e-12, %v135_v63  ;;  %v363_v9 = vmul.f32 %v793_v27, %v362_v54  ;;  %v342_v11 = vsub.f32 1.5, %v341_v56 }
  0x8a   :  { %v1148_v10 = vpop.eup %802  ;;  %v509_v17 = vmul.f32 %v1142_v3, %v1120_v29  ;;  %804 = vrsqrt.f32 %v1138_v61  ;;  %v353_v35 = vmul.f32 %v1122_v34, %v352_v60  ;;  %vm525_vm10 = vweird.f32 %v1136_v59 }
  0x8b   :  { %v520_v22 = vmul.f32 %v1136_v59, %v519_v4  ;;  %v499_v15 = vmul.f32 %v1148_v10, %v1124_v39  ;;  %806 = vrsqrt.f32 %v1140_v62  ;;  %v367_v33 = vsel %vm366_vm4, %v793_v27, %v363_v9  ;;  %vm526_vm14 = vmor %vm524_vm8, %vm525_vm10 }
  0x8c   :  { %v510_v23 = vmul.f32 %v1142_v3, %v509_v17  ;;  %808 = vrsqrt.f32 %v1146_v5  ;;  %v543_v45 = vmul.f32 %v367_v33, %v904_v0  ;;  %v357_v51 = vsel %vm1165_vm6, %v1122_v34, %v353_v35 }
  0x8d   :  { %v521_v41 = vmul.f32 0.5, %v520_v22  ;;  %v500_v16 = vmul.f32 %v1148_v10, %v499_v15  ;;  %v343_v27 = vmul.f32 %v1126_v40, %v342_v11  ;;  %v542_v11 = vmul.f32 %v357_v51, %v909_v1 }
  0x8e   :  { %v511_v47 = vmul.f32 0.5, %v510_v23  ;;  %560 = vmatpush.xpose.msra.mxu0 %v543_v45  ;;  %759 = vmatpush.xpose.msra.mxu2 %v543_v45  ;;  %vm515_vm13 = vweird.f32 %v1142_v3  ;;  %vm494_vm15 = vweird.f32 %v1138_v61  ;;  %vm334_vm0 = vweird.f32 %v1140_v62 }
  0x8f   :  { %v522_v52 = vsub.f32 1.5, %v521_v41  ;;  %v501_v53 = vmul.f32 0.5, %v500_v16  ;;  %v167_v0 = vpop.xlane.xlu0 %166  ;;  %v133_v54 = vpop.xlane.xlu1 %132  ;;  %v347_v1 = vsel %vm1195_vm12, %v1126_v40, %v343_v27  ;;  %vm324_vm1 = vweird.f32 %v1146_v5  ;;  %vm1231_vm2 = vmor %vm514_vm9, %vm515_vm13 }
  0x90   :  { %v1176_v56 = vpop.eup %804  ;;  %v512_v57 = vsub.f32 1.5, %v511_v47  ;;  %v1178_v58 = vadd.f32 1e-12, %v167_v0  ;;  %v165_v34 = vpop.xlane.xlu2 %164  ;;  %v1180_v60 = vadd.f32 1e-12, %v133_v54  ;;  %v541_v47 = vmul.f32 %v347_v1, %v914_v2 }
  0x91   :  { %v1183_v63 = vpop.eup %806  ;;  %v489_v4 = vmul.f32 %v1176_v56, %v1138_v61  ;;  %v1188_v9 = vadd.f32 1e-12, %v165_v34  ;;  %v523_v22 = vmul.f32 %v1136_v59, %v522_v52  ;;  %v502_v21 = vsub.f32 1.5, %v501_v53 }
  0x92   :  { %v1200_v15 = vpop.eup %808  ;;  %v329_v23 = vmul.f32 %v1183_v63, %v1140_v62  ;;  %810 = vrsqrt.f32 %v1178_v58  ;;  %561 = vmatpush.xpose.msra.mxu0 %v542_v11  ;;  %760 = vmatpush.xpose.msra.mxu2 %v542_v11  ;;  %v513_v16 = vmul.f32 %v1142_v3, %v512_v57  ;;  %vm505_vm3 = vweird.f32 %v1148_v10 }
  0x93   :  { %v490_v33 = vmul.f32 %v1176_v56, %v489_v4  ;;  %v319_v35 = vmul.f32 %v1200_v15, %v1146_v5  ;;  %812 = vrsqrt.f32 %v1188_v9  ;;  %v527_v40 = vsel %vm526_vm14, %v1136_v59, %v523_v22  ;;  %vm1263_vm5 = vmor %vm504_vm11, %vm505_vm3 }
  0x94   :  { %v330_v41 = vmul.f32 %v1183_v63, %v329_v23  ;;  %814 = vrsqrt.f32 %v1180_v60  ;;  %v559_v51 = vmul.f32 %v527_v40, %v925_v6  ;;  %v517_v52 = vsel %vm1231_vm2, %v1142_v3, %v513_v16 }
  0x95   :  { %v491_v45 = vmul.f32 0.5, %v490_v33  ;;  %v320_v46 = vmul.f32 %v1200_v15, %v319_v35  ;;  %v503_v53 = vmul.f32 %v1148_v10, %v502_v21  ;;  %vm335_vm4 = vweird.f32 %v1183_v63 }
  0x96   :  { %v331_v27 = vmul.f32 0.5, %v330_v41  ;;  %562 = vmatpush.xpose.msra.mxu0 %v541_v47  ;;  %761 = vmatpush.xpose.msra.mxu2 %v541_v47  ;;  %v558_v21 = vmul.f32 %v517_v52, %v930_v7  ;;  %vm325_vm6 = vweird.f32 %v1200_v15  ;;  %vm336_vm7 = vmor %vm334_vm0, %vm335_vm4  ;;  %vm495_vm8 = vweird.f32 %v1176_v56 }
  0x97   :  { %v321_v59 = vmul.f32 0.5, %v320_v46  ;;  %v163_v2 = vpop.xlane.xlu1 %162  ;;  %v131_v6 = vpop.xlane.xlu0 %130  ;;  %583 = vmatpush.xpose.msra.mxu1 %v559_v51  ;;  %775 = vmatpush.xpose.msra.mxu3 %v559_v51  ;;  %v492_v11 = vsub.f32 1.5, %v491_v45  ;;  %v507_v7 = vsel %vm1263_vm5, %v1148_v10, %v503_v53  ;;  %vm484_vm9 = vweird.f32 %v1178_v58  ;;  %vm1293_vm10 = vmor %vm324_vm1, %vm325_vm6 }
  0x98   :  { %v1240_v0 = vpop.eup %810  ;;  %v332_v29 = vsub.f32 1.5, %v331_v27  ;;  %v1242_v54 = vadd.f32 1e-12, %v163_v2  ;;  %v1244_v57 = vadd.f32 1e-12, %v131_v6  ;;  %v129_v34 = vpop.xlane.xlu2 %128  ;;  %v557_v27 = vmul.f32 %v507_v7, %v935_v8  ;;  %vm1304_vm12 = vmor %vm494_vm15, %vm495_vm8 }
  0x99   :  { %v1247_v4 = vpop.eup %812  ;;  %v322_v3 = vsub.f32 1.5, %v321_v59  ;;  %v479_v17 = vmul.f32 %v1240_v0, %v1178_v58  ;;  %v1251_v22 = vadd.f32 1e-12, %v129_v34  ;;  %v493_v10 = vmul.f32 %v1176_v56, %v492_v11 }
  0x9a   :  { %v1253_v23 = vpop.eup %814  ;;  %v469_v1 = vmul.f32 %v1247_v4, %v1188_v9  ;;  %816 = vrsqrt.f32 %v1242_v54  ;;  %v333_v39 = vmul.f32 %v1183_v63, %v332_v29  ;;  %vm314_vm11 = vweird.f32 %v1180_v60 }
  0x9b   :  { %v480_v35 = vmul.f32 %v1240_v0, %v479_v17  ;;  %v309_v41 = vmul.f32 %v1253_v23, %v1180_v60  ;;  %818 = vrsqrt.f32 %v1244_v57  ;;  %584 = vmatpush.xpose.msra.mxu1 %v558_v21  ;;  %776 = vmatpush.xpose.msra.mxu3 %v558_v21  ;;  %v323_v16 = vmul.f32 %v1200_v15, %v322_v3 }
  0x9c   :  { %v470_v40 = vmul.f32 %v1247_v4, %v469_v1  ;;  %820 = vrsqrt.f32 %v1251_v22  ;;  %v337_v51 = vsel %vm336_vm7, %v1183_v63, %v333_v39  ;;  %vm315_vm13 = vweird.f32 %v1253_v23 }
  0x9d   :  { %v481_v45 = vmul.f32 0.5, %v480_v35  ;;  %v310_v46 = vmul.f32 %v1253_v23, %v309_v41  ;;  %v540_v59 = vmul.f32 %v337_v51, %v951_v13  ;;  %v327_v63 = vsel %vm1293_vm10, %v1200_v15, %v323_v16  ;;  %vm316_vm14 = vmor %vm314_vm11, %vm315_vm13 }
  0x9e   :  { %v471_v47 = vmul.f32 0.5, %v470_v40  ;;  %v497_v15 = vsel %vm1304_vm12, %v1176_v56, %v493_v10  ;;  %v539_v41 = vmul.f32 %v327_v63, %v956_v14  ;;  %vm485_vm15 = vweird.f32 %v1240_v0 }
  0x9f   :  { %v311_v62 = vmul.f32 0.5, %v310_v46  ;;  %v161_v2 = vpop.xlane.xlu0 %160  ;;  %v127_v6 = vpop.xlane.xlu1 %126  ;;  %v482_v52 = vsub.f32 1.5, %v481_v45  ;;  %585 = vmatpush.xpose.msra.mxu1 %v557_v27  ;;  %777 = vmatpush.xpose.msra.mxu3 %v557_v27  ;;  %v556_v56 = vmul.f32 %v497_v15, %v946_v12  ;;  %vm474_vm0 = vweird.f32 %v1188_v9  ;;  %vm486_vm1 = vmor %vm484_vm9, %vm485_vm15 }
  0xa0   :  { %v1308_v5 = vpop.eup %816  ;;  %v1310_v53 = vadd.f32 1e-12, %v161_v2  ;;  %v159_v13 = vpop.xlane.xlu2 %158  ;;  %v1312_v29 = vadd.f32 1e-12, %v127_v6  ;;  %v472_v61 = vsub.f32 1.5, %v471_v47  ;;  %563 = vmatpush.xpose.msra.mxu0 %v540_v59  ;;  %762 = vmatpush.xpose.msra.mxu2 %v540_v59  ;;  %vm475_vm2 = vweird.f32 %v1247_v4 }
  0xa1   :  { %v1317_v34 = vpop.eup %818  ;;  %v312_v11 = vsub.f32 1.5, %v311_v62  ;;  %v459_v3 = vmul.f32 %v1308_v5, %v1242_v54  ;;  %v1321_v17 = vadd.f32 1e-12, %v159_v13  ;;  %v483_v12 = vmul.f32 %v1240_v0, %v482_v52  ;;  %vm1363_vm4 = vmor %vm474_vm0, %vm475_vm2 }
  0xa2   :  { %v1323_v1 = vpop.eup %820  ;;  %v299_v21 = vmul.f32 %v1317_v34, %v1244_v57  ;;  %822 = vrsqrt.f32 %v1310_v53  ;;  %v473_v14 = vmul.f32 %v1247_v4, %v472_v61  ;;  %vm464_vm3 = vweird.f32 %v1242_v54 }
  0xa3   :  { %v460_v33 = vmul.f32 %v1308_v5, %v459_v3  ;;  %v289_v35 = vmul.f32 %v1323_v1, %v1251_v22  ;;  %824 = vrsqrt.f32 %v1321_v17  ;;  %586 = vmatpush.xpose.msra.mxu1 %v556_v56  ;;  %778 = vmatpush.xpose.msra.mxu3 %v556_v56  ;;  %v313_v40 = vmul.f32 %v1253_v23, %v312_v11 }
  0xa4   :  { %v300_v7 = vmul.f32 %v1317_v34, %v299_v21  ;;  %826 = vrsqrt.f32 %v1312_v29  ;;  %564 = vmatpush.xpose.msra.mxu0 %v539_v41  ;;  %763 = vmatpush.xpose.msra.mxu2 %v539_v41  ;;  %v487_v47 = vsel %vm486_vm1, %v1240_v0, %v483_v12  ;;  %v477_v8 = vsel %vm1363_vm4, %v1247_v4, %v473_v14 }
  0xa5   :  { %v461_v39 = vmul.f32 0.5, %v460_v33  ;;  %v290_v16 = vmul.f32 %v1323_v1, %v289_v35  ;;  %v317_v46 = vsel %vm316_vm14, %v1253_v23, %v313_v40  ;;  %v555_v59 = vmul.f32 %v487_v47, %v967_v18 }
  0xa6   :  { %v301_v45 = vmul.f32 0.5, %v300_v7  ;;  %v538_v60 = vmul.f32 %v317_v46, %v972_v19  ;;  %vm305_vm5 = vweird.f32 %v1317_v34  ;;  %vm304_vm6 = vweird.f32 %v1244_v57 }
  0xa7   :  { %v291_v10 = vmul.f32 0.5, %v290_v16  ;;  %v157_v51 = vpop.xlane.xlu1 %156  ;;  %v125_v27 = vpop.xlane.xlu0 %124  ;;  %v462_v0 = vsub.f32 1.5, %v461_v39  ;;  %587 = vmatpush.xpose.msra.mxu1 %v555_v59  ;;  %779 = vmatpush.xpose.msra.mxu3 %v555_v59  ;;  %v554_v11 = vmul.f32 %v477_v8, %v977_v20  ;;  %vm306_vm7 = vmor %vm304_vm6, %vm305_vm5  ;;  %vm465_vm8 = vweird.f32 %v1308_v5 }
  0xa8   :  { %v1354_v28 = vpop.eup %822  ;;  %v302_v62 = vsub.f32 1.5, %v301_v45  ;;  %v1357_v23 = vadd.f32 1e-12, %v157_v51  ;;  %v1359_v58 = vadd.f32 1e-12, %v125_v27  ;;  %v123_v2 = vpop.xlane.xlu2 %122  ;;  %565 = vmatpush.xpose.msra.mxu0 %v538_v60  ;;  %764 = vmatpush.xpose.msra.mxu2 %v538_v60  ;;  %vm294_vm9 = vweird.f32 %v1251_v22  ;;  %vm466_vm10 = vmor %vm464_vm3, %vm465_vm8 }
  0xa9   :  { %v1367_v19 = vpop.eup %824  ;;  %v449_v63 = vmul.f32 %v1354_v28, %v1310_v53  ;;  %v1371_v18 = vadd.f32 1e-12, %v123_v2  ;;  %v292_v9 = vsub.f32 1.5, %v291_v10  ;;  %v463_v57 = vmul.f32 %v1308_v5, %v462_v0 }
  0xaa   :  { %v1376_v52 = vpop.eup %826  ;;  %v439_v13 = vmul.f32 %v1367_v19, %v1321_v17  ;;  %828 = vrsqrt.f32 %v1357_v23  ;;  %v303_v3 = vmul.f32 %v1317_v34, %v302_v62  ;;  %vm295_vm11 = vweird.f32 %v1323_v1 }
  0xab   :  { %v450_v15 = vmul.f32 %v1354_v28, %v449_v63  ;;  %v279_v61 = vmul.f32 %v1376_v52, %v1312_v29  ;;  %830 = vrsqrt.f32 %v1359_v58  ;;  %588 = vmatpush.xpose.msra.mxu1 %v554_v11  ;;  %780 = vmatpush.xpose.msra.mxu3 %v554_v11  ;;  %v293_v20 = vmul.f32 %v1323_v1, %v292_v9  ;;  %vm1411_vm12 = vmor %vm294_vm9, %vm295_vm11 }
  0xac   :  { %v440_v4 = vmul.f32 %v1367_v19, %v439_v13  ;;  %832 = vrsqrt.f32 %v1371_v18  ;;  %v307_v33 = vsel %vm306_vm7, %v1317_v34, %v303_v3  ;;  %v467_v40 = vsel %vm466_vm10, %v1308_v5, %v463_v57 }
  0xad   :  { %v451_v21 = vmul.f32 0.5, %v450_v15  ;;  %v280_v56 = vmul.f32 %v1376_v52, %v279_v61  ;;  %v537_v7 = vmul.f32 %v307_v33, %v993_v25  ;;  %v553_v34 = vmul.f32 %v467_v40, %v988_v24 }
  0xae   :  { %v441_v35 = vmul.f32 0.5, %v440_v4  ;;  %v297_v47 = vsel %vm1411_vm12, %v1323_v1, %v293_v20  ;;  %vm454_vm13 = vweird.f32 %v1310_v53  ;;  %vm284_vm14 = vweird.f32 %v1312_v29 }
  0xaf   :  { %v281_v41 = vmul.f32 0.5, %v280_v56  ;;  %v155_v12 = vpop.xlane.xlu0 %154  ;;  %v121_v39 = vpop.xlane.xlu1 %120  ;;  %v452_v14 = vsub.f32 1.5, %v451_v21  ;;  %566 = vmatpush.xpose.msra.mxu0 %v537_v7  ;;  %765 = vmatpush.xpose.msra.mxu2 %v537_v7  ;;  %v536_v2 = vmul.f32 %v297_v47, %v998_v26  ;;  %vm285_vm15 = vweird.f32 %v1376_v52 }
  0xb0   :  { %v1402_v16 = vpop.eup %828  ;;  %v1405_v45 = vadd.f32 1e-12, %v155_v12  ;;  %v153_v54 = vpop.xlane.xlu2 %152  ;;  %v1407_v46 = vadd.f32 1e-12, %v121_v39  ;;  %589 = vmatpush.xpose.msra.mxu1 %v553_v34  ;;  %781 = vmatpush.xpose.msra.mxu3 %v553_v34  ;;  %v442_v27 = vsub.f32 1.5, %v441_v35  ;;  %vm444_vm0 = vweird.f32 %v1321_v17  ;;  %vm286_vm2 = vmor %vm284_vm14, %vm285_vm15 }
  0xb1   :  { %v1415_v25 = vpop.eup %830  ;;  %v282_v5 = vsub.f32 1.5, %v281_v41  ;;  %v429_v60 = vmul.f32 %v1402_v16, %v1357_v23  ;;  %v1419_v24 = vadd.f32 1e-12, %v153_v54  ;;  %v453_v8 = vmul.f32 %v1354_v28, %v452_v14 }
  0xb2   :  { %v1424_v51 = vpop.eup %832  ;;  %v269_v22 = vmul.f32 %v1415_v25, %v1359_v58  ;;  %834 = vrsqrt.f32 %v1405_v45  ;;  %vm434_vm1 = vweird.f32 %v1357_v23  ;;  %vm455_vm3 = vweird.f32 %v1354_v28 }
  0xb3   :  { %v430_v62 = vmul.f32 %v1402_v16, %v429_v60  ;;  %v259_v59 = vmul.f32 %v1424_v51, %v1371_v18  ;;  %836 = vrsqrt.f32 %v1419_v24  ;;  %v283_v6 = vmul.f32 %v1376_v52, %v282_v5  ;;  %567 = vmatpush.xpose.msra.mxu0 %v536_v2  ;;  %766 = vmatpush.xpose.msra.mxu2 %v536_v2  ;;  %vm456_vm4 = vmor %vm454_vm13, %vm455_vm3 }
  0xb4   :  { %v270_v1 = vmul.f32 %v1415_v25, %v269_v22  ;;  %838 = vrsqrt.f32 %v1407_v46  ;;  %v443_v4 = vmul.f32 %v1367_v19, %v442_v27  ;;  %vm445_vm5 = vweird.f32 %v1367_v19 }
  0xb5   :  { %v431_v0 = vmul.f32 0.5, %v430_v62  ;;  %v260_v63 = vmul.f32 %v1424_v51, %v259_v59  ;;  %v287_v13 = vsel %vm286_vm2, %v1376_v52, %v283_v6  ;;  %v457_v21 = vsel %vm456_vm4, %v1354_v28, %v453_v8  ;;  %vm446_vm7 = vmor %vm444_vm0, %vm445_vm5 }
  0xb6   :  { %v271_v9 = vmul.f32 0.5, %v270_v1  ;;  %v535_v29 = vmul.f32 %v287_v13, %v1014_v31  ;;  %v552_v20 = vmul.f32 %v457_v21, %v1009_v30  ;;  %vm275_vm6 = vweird.f32 %v1415_v25 }
  0xb7   :  { %v261_v26 = vmul.f32 0.5, %v260_v63  ;;  %v151_v15 = vpop.xlane.xlu1 %150  ;;  %v119_v61 = vpop.xlane.xlu0 %118  ;;  %v432_v3 = vsub.f32 1.5, %v431_v0  ;;  %vm274_vm8 = vweird.f32 %v1359_v58  ;;  %v447_v39 = vsel %vm446_vm7, %v1367_v19, %v443_v4 }
  0xb8   :  { %v1452_v11 = vpop.eup %834  ;;  %v1456_v56 = vadd.f32 1e-12, %v151_v15  ;;  %v117_v57 = vpop.xlane.xlu2 %116  ;;  %v272_v53 = vsub.f32 1.5, %v271_v9  ;;  %v1463_v35 = vadd.f32 1e-12, %v119_v61  ;;  %568 = vmatpush.xpose.msra.mxu0 %v535_v29  ;;  %767 = vmatpush.xpose.msra.mxu2 %v535_v29  ;;  %vm264_vm9 = vweird.f32 %v1371_v18  ;;  %vm276_vm11 = vmor %vm274_vm8, %vm275_vm6 }
  0xb9   :  { %v1458_v52 = vpop.eup %836  ;;  %v419_v33 = vmul.f32 %v1452_v11, %v1405_v45  ;;  %v1470_v28 = vadd.f32 1e-12, %v117_v57  ;;  %v262_v7 = vsub.f32 1.5, %v261_v26  ;;  %590 = vmatpush.xpose.msra.mxu1 %v552_v20  ;;  %782 = vmatpush.xpose.msra.mxu3 %v552_v20  ;;  %v551_v34 = vmul.f32 %v447_v39, %v1019_v32 }
  0xba   :  { %v1465_v41 = vpop.eup %838  ;;  %v409_v31 = vmul.f32 %v1458_v52, %v1419_v24  ;;  %840 = vrsqrt.f32 %v1456_v56  ;;  %v273_v54 = vmul.f32 %v1415_v25, %v272_v53  ;;  %vm254_vm10 = vweird.f32 %v1407_v46 }
  0xbb   :  { %v420_v40 = vmul.f32 %v1452_v11, %v419_v33  ;;  %v249_v30 = vmul.f32 %v1465_v41, %v1407_v46  ;;  %842 = vrsqrt.f32 %v1463_v35  ;;  %v433_v17 = vmul.f32 %v1402_v16, %v432_v3 }
  0xbc   :  { %v410_v12 = vmul.f32 %v1458_v52, %v409_v31  ;;  %844 = vrsqrt.f32 %v1470_v28  ;;  %vm435_vm12 = vweird.f32 %v1402_v16  ;;  %vm424_vm13 = vweird.f32 %v1405_v45 }
  0xbd   :  { %v250_v14 = vmul.f32 %v1465_v41, %v249_v30  ;;  %v421_v10 = vmul.f32 0.5, %v420_v40  ;;  %591 = vmatpush.xpose.msra.mxu1 %v551_v34  ;;  %783 = vmatpush.xpose.msra.mxu3 %v551_v34  ;;  %v277_v32 = vsel %vm276_vm11, %v1415_v25, %v273_v54  ;;  %vm436_vm14 = vmor %vm434_vm1, %vm435_vm12  ;;  %v263_v47 = vmul.f32 %v1424_v51, %v262_v7 }
  0xbe   :  { %v411_v58 = vmul.f32 0.5, %v410_v12  ;;  %v534_v27 = vmul.f32 %v277_v32, %v1035_v37  ;;  %v437_v62 = vsel %vm436_vm14, %v1402_v16, %v433_v17  ;;  %vm265_vm15 = vweird.f32 %v1424_v51 }
  0xbf   :  { %v251_v19 = vmul.f32 0.5, %v250_v14  ;;  %v149_v5 = vpop.xlane.xlu0 %148  ;;  %v115_v60 = vpop.xlane.xlu1 %114  ;;  %v550_v6 = vmul.f32 %v437_v62, %v1030_v36  ;;  %v422_v37 = vsub.f32 1.5, %v421_v10  ;;  %vm266_vm0 = vmor %vm264_vm9, %vm265_vm15  ;;  %vm414_vm1 = vweird.f32 %v1419_v24 }
  0xc0   :  { %v1499_v22 = vpop.eup %840  ;;  %v1503_v59 = vadd.f32 1e-12, %v149_v5  ;;  %v147_v1 = vpop.xlane.xlu2 %146  ;;  %569 = vmatpush.xpose.msra.mxu0 %v534_v27  ;;  %768 = vmatpush.xpose.msra.mxu2 %v534_v27  ;;  %v1518_v8 = vadd.f32 1e-12, %v115_v60  ;;  %v412_v9 = vsub.f32 1.5, %v411_v58  ;;  %v267_v15 = vsel %vm266_vm0, %v1424_v51, %v263_v47 }
  0xc1   :  { %v1506_v2 = vpop.eup %842  ;;  %v252_v25 = vsub.f32 1.5, %v251_v19  ;;  %v399_v23 = vmul.f32 %v1499_v22, %v1456_v56  ;;  %v1511_v0 = vadd.f32 1e-12, %v147_v1  ;;  %592 = vmatpush.xpose.msra.mxu1 %v550_v6  ;;  %784 = vmatpush.xpose.msra.mxu3 %v550_v6  ;;  %v533_v3 = vmul.f32 %v267_v15, %v1040_v38 }
  0xc2   :  { %v1513_v63 = vpop.eup %844  ;;  %v239_v16 = vmul.f32 %v1506_v2, %v1463_v35  ;;  %846 = vrsqrt.f32 %v1503_v59  ;;  %vm255_vm2 = vweird.f32 %v1465_v41  ;;  %v423_v18 = vmul.f32 %v1452_v11, %v422_v37 }
  0xc3   :  { %v400_v26 = vmul.f32 %v1499_v22, %v399_v23  ;;  %v229_v36 = vmul.f32 %v1513_v63, %v1470_v28  ;;  %848 = vrsqrt.f32 %v1511_v0  ;;  %v253_v29 = vmul.f32 %v1465_v41, %v252_v25  ;;  %vm256_vm6 = vmor %vm254_vm10, %vm255_vm2 }
  0xc4   :  { %v240_v13 = vmul.f32 %v1506_v2, %v239_v16  ;;  %850 = vrsqrt.f32 %v1518_v8  ;;  %vm425_vm3 = vweird.f32 %v1452_v11  ;;  %vm404_vm4 = vweird.f32 %v1456_v56  ;;  %570 = vmatpush.xpose.msra.mxu0 %v533_v3  ;;  %769 = vmatpush.xpose.msra.mxu2 %v533_v3 }
  0xc5   :  { %v401_v61 = vmul.f32 0.5, %v400_v26  ;;  %v230_v4 = vmul.f32 %v1513_v63, %v229_v36  ;;  %vm244_vm5 = vweird.f32 %v1463_v35  ;;  %v413_v53 = vmul.f32 %v1458_v52, %v412_v9  ;;  %vm426_vm8 = vmor %vm424_vm13, %vm425_vm3 }
  0xc6   :  { %v241_v21 = vmul.f32 0.5, %v240_v13  ;;  %vm415_vm7 = vweird.f32 %v1458_v52  ;;  %v257_v31 = vsel %vm256_vm6, %v1465_v41, %v253_v29  ;;  %vm234_vm9 = vweird.f32 %v1470_v28 }
  0xc7   :  { %v231_v57 = vmul.f32 0.5, %v230_v4  ;;  %v145_v38 = vpop.xlane.xlu1 %144  ;;  %v113_v51 = vpop.xlane.xlu0 %112  ;;  %v532_v12 = vmul.f32 %v257_v31, %v1056_v43  ;;  %v427_v39 = vsel %vm426_vm8, %v1452_v11, %v423_v18  ;;  %v402_v45 = vsub.f32 1.5, %v401_v61  ;;  %vm416_vm10 = vmor %vm414_vm1, %vm415_vm7 }
  0xc8   :  { %v1544_v33 = vpop.eup %846  ;;  %v242_v20 = vsub.f32 1.5, %v241_v21  ;;  %v1549_v7 = vadd.f32 1e-12, %v145_v38  ;;  %v1551_v40 = vadd.f32 1e-12, %v113_v51  ;;  %v55_v14 = vpop.xlane.xlu2 %54  ;;  %v549_v54 = vmul.f32 %v427_v39, %v1051_v42 }
  0xc9   :  { %v1553_v46 = vpop.eup %848  ;;  %v389_v30 = vmul.f32 %v1544_v33, %v1503_v59  ;;  %v232_v10 = vsub.f32 1.5, %v231_v57  ;;  %571 = vmatpush.xpose.msra.mxu0 %v532_v12  ;;  %770 = vmatpush.xpose.msra.mxu2 %v532_v12  ;;  %v1575_v42 = vadd.f32 1e-12, %v55_v14  ;;  %v417_v11 = vsel %vm416_vm10, %v1458_v52, %v413_v53  ;;  %v860_v57 = vld [vmem:[%s1774_s2 + $0x90] sm:$0xff]  ;;  %v861_v12 = vld [vmem:[%s1774_s2 + $0x88] sm:$0xff] }
  0xca   :  { %v1560_v41 = vpop.eup %850  ;;  %v379_v34 = vmul.f32 %v1553_v46, %v1511_v0  ;;  %852 = vrsqrt.f32 %v1549_v7  ;;  %593 = vmatpush.xpose.msra.mxu1 %v549_v54  ;;  %785 = vmatpush.xpose.msra.mxu3 %v549_v54  ;;  %v243_v19 = vmul.f32 %v1506_v2, %v242_v20  ;;  %vm394_vm11 = vweird.f32 %v1503_v59  ;;  %v863_v54 = vld [vmem:[%s1774_s2 + $0x80] sm:$0xff] }
  0xcb   :  { %v390_v17 = vmul.f32 %v1544_v33, %v389_v30  ;;  %v219_v58 = vmul.f32 %v1560_v41, %v1518_v8  ;;  %854 = vrsqrt.f32 %v1551_v40  ;;  %vm245_vm12 = vweird.f32 %v1506_v2 }
  0xcc   :  { %v380_v43 = vmul.f32 %v1553_v46, %v379_v34  ;;  %vm384_vm13 = vweird.f32 %v1511_v0  ;;  %856 = vrsqrt.f32 %v1575_v42  ;;  %v548_v24 = vmul.f32 %v417_v11, %v1061_v44  ;;  %vm246_vm14 = vmor %vm244_vm5, %vm245_vm12 }
  0xcd   :  { %v391_v32 = vmul.f32 0.5, %v390_v17  ;;  %v220_v5 = vmul.f32 %v1560_v41, %v219_v58  ;;  %v403_v52 = vmul.f32 %v1499_v22, %v402_v45  ;;  %v247_v62 = vsel %vm246_vm14, %v1506_v2, %v243_v19  ;;  %v862_v45 = vld [vmem:[%s1774_s2] sm:$0xff] }
  0xce   :  { %v381_v60 = vmul.f32 0.5, %v380_v43  ;;  %vm405_vm15 = vweird.f32 %v1499_v22  ;;  %594 = vmatpush.xpose.msra.mxu1 %v548_v24  ;;  %786 = vmatpush.xpose.msra.mxu3 %v548_v24  ;;  %v531_v6 = vmul.f32 %v247_v62, %v1077_v49  ;;  %v233_v35 = vmul.f32 %v1513_v63, %v232_v10 }
  0xcf   :  { %v392_v47 = vsub.f32 1.5, %v391_v32  ;;  %v221_v27 = vmul.f32 0.5, %v220_v5  ;;  %v53_v1 = vpop.xlane.xlu0 %52  ;;  %vm406_vm0 = vmor %vm404_vm4, %vm405_vm15  ;;  %vm235_vm1 = vweird.f32 %v1513_v63  ;;  %vm224_vm2 = vweird.f32 %v1518_v8  ;;  %v865_v5 = vld [vmem:[%s1778_s1] sm:$0xff] }
  0xd0   :  { %v1590_v25 = vpop.eup %852  ;;  %v382_v23 = vsub.f32 1.5, %v381_v60  ;;  %v1595_v44 = vadd.f32 1e-12, %v53_v1  ;;  %v407_v9 = vsel %vm406_vm0, %v1499_v22, %v403_v52  ;;  %572 = vmatpush.xpose.msra.mxu0 %v531_v6  ;;  %771 = vmatpush.xpose.msra.mxu2 %v531_v6  ;;  %vm236_vm3 = vmor %vm234_vm9, %vm235_vm1  ;;  %vm225_vm4 = vweird.f32 %v1560_v41 }
  0xd1   :  { %v1598_v37 = vpop.eup %854  ;;  %v222_v2 = vsub.f32 1.5, %v221_v27  ;;  %v369_v16 = vmul.f32 %v1590_v25, %v1549_v7  ;;  %v547_v56 = vmul.f32 %v407_v9, %v1072_v48  ;;  %v237_v22 = vsel %vm236_vm3, %v1513_v63, %v233_v35  ;;  %vm226_vm5 = vmor %vm224_vm2, %vm225_vm4 }
  0xd2   :  { %v209_v49 = vmul.f32 %v1598_v37, %v1551_v40  ;;  %858 = vrsqrt.f32 %v1595_v44  ;;  %v1615_v13 = vpop.eup %856  ;;  %v530_v48 = vmul.f32 %v237_v22, %v1082_v50  ;;  %v393_v28 = vmul.f32 %v1544_v33, %v392_v47 }
  0xd3   :  { %v370_v26 = vmul.f32 %v1590_v25, %v369_v16  ;;  %v223_v36 = vmul.f32 %v1560_v41, %v222_v2  ;;  %595 = vmatpush.xpose.msra.mxu1 %v547_v56  ;;  %787 = vmatpush.xpose.msra.mxu3 %v547_v56  ;;  %vm395_vm6 = vweird.f32 %v1544_v33  ;;  %v69_v61 = vmul.f32 %v1615_v13, %v1575_v42 }
  0xd4   :  { %v210_v15 = vmul.f32 %v1598_v37, %v209_v49  ;;  %vm396_vm7 = vmor %vm394_vm11, %vm395_vm6  ;;  %v383_v3 = vmul.f32 %v1553_v46, %v382_v23  ;;  %573 = vmatpush.xpose.msra.mxu0 %v530_v48  ;;  %772 = vmatpush.xpose.msra.mxu2 %v530_v48  ;;  %vm385_vm8 = vweird.f32 %v1553_v46  ;;  %vm215_vm10 = vweird.f32 %v1598_v37 }
  0xd5   :  { %v371_v63 = vmul.f32 0.5, %v370_v26  ;;  %v227_v4 = vsel %vm226_vm5, %v1560_v41, %v223_v36  ;;  %v397_v8 = vsel %vm396_vm7, %v1544_v33, %v393_v28  ;;  %v70_v18 = vmul.f32 %v1615_v13, %v69_v61  ;;  %vm1638_vm9 = vmor %vm384_vm13, %vm385_vm8 }
  0xd6   :  { %v211_v29 = vmul.f32 0.5, %v210_v15  ;;  %v529_v50 = vmul.f32 %v227_v4, %v1096_v55  ;;  %v546_v59 = vmul.f32 %v860_v57, %v397_v8  ;;  %v387_v53 = vsel %vm1638_vm9, %v1553_v46, %v383_v3 }
  0xd7   :  { %v372_v21 = vsub.f32 1.5, %v371_v63  ;;  %vm375_vm11 = vweird.f32 %v1590_v25  ;;  %vm374_vm12 = vweird.f32 %v1549_v7  ;;  %v71_v33 = vmul.f32 0.5, %v70_v18 }
  0xd8   :  { %v859_v51 = vpop.eup %858  ;;  %v212_v55 = vsub.f32 1.5, %v211_v29  ;;  %596 = vmatpush.xpose.msra.mxu1 %v546_v59  ;;  %788 = vmatpush.xpose.msra.mxu3 %v546_v59  ;;  %vm214_vm13 = vweird.f32 %v1551_v40  ;;  %vm1652_vm14 = vmor %vm374_vm12, %vm375_vm11  ;;  %vm75_vm15 = vweird.f32 %v1615_v13  ;;  %v545_v39 = vmul.f32 %v861_v12, %v387_v53 }
  0xd9   :  { %v59_v20 = vmul.f32 %v859_v51, %v1595_v44  ;;  %v373_v0 = vmul.f32 %v1590_v25, %v372_v21  ;;  %574 = vmatpush.xpose.msra.mxu0 %v529_v50  ;;  %773 = vmatpush.xpose.msra.mxu2 %v529_v50  ;;  %v72_v7 = vsub.f32 1.5, %v71_v33  ;;  %vm216_vm0 = vmor %vm214_vm13, %vm215_vm10  ;;  %vm74_vm1 = vweird.f32 %v1575_v42  ;;  %v864_v42 = vld [vmem:[%s1778_s1 + $0x8] sm:$0xff] }
  0xda   :  { %v213_v31 = vmul.f32 %v1598_v37, %v212_v55  ;;  %vm76_vm2 = vmor %vm74_vm1, %vm75_vm15  ;;  %vm65_vm3 = vweird.f32 %v859_v51  ;;  %vm64_vm4 = vweird.f32 %v1595_v44 }
  0xdb   :  { %v60_v30 = vmul.f32 %v859_v51, %v59_v20  ;;  %v377_v40 = vsel %vm1652_vm14, %v1590_v25, %v373_v0  ;;  %v73_v17 = vmul.f32 %v1615_v13, %v72_v7  ;;  %vm66_vm5 = vmor %vm64_vm4, %vm65_vm3 }
  0xdc   :  { %v217_v14 = vsel %vm216_vm0, %v1598_v37, %v213_v31  ;;  %597 = vmatpush.xpose.msra.mxu1 %v545_v39  ;;  %789 = vmatpush.xpose.msra.mxu3 %v545_v39  ;;  %v544_v10 = vmul.f32 %v863_v54, %v377_v40 }
  0xdd   :  { %v61_v41 = vmul.f32 0.5, %v60_v30  ;;  %v528_v34 = vmul.f32 %v862_v45, %v217_v14  ;;  %v77_v43 = vsel %vm76_vm2, %v1615_v13, %v73_v17 }
  0xde   :  { %v79_v11 = vmul.f32 %v864_v42, %v77_v43 }
  0xdf   :  { %v62_v58 = vsub.f32 1.5, %v61_v41  ;;  %575 = vmatpush.xpose.msra.mxu0 %v528_v34  ;;  %774 = vmatpush.xpose.msra.mxu2 %v528_v34 }
  0xe0   :  { %598 = vmatpush.xpose.msra.mxu1 %v544_v10  ;;  %790 = vmatpush.xpose.msra.mxu3 %v544_v10 }
  0xe1   :  { %v63_v19 = vmul.f32 %v859_v51, %v62_v58 }
  0xe2   :  { %579 = vmatmul.f32.vlgmr.msra.gmra.mxu2 %v79_v11 }
  0xe3   :  { %v67_v32 = vsel %vm66_vm5, %v859_v51, %v63_v19  ;;  %602 = vmatmul.f32.vlgmr.msra.gmra.mxu3 %v79_v11 }
  0xe4   :  { %v78_v60 = vmul.f32 %v865_v5, %v67_v32 }
  0xe6   :  { %576 = vmatmul.f32.vlgmr.msra.gmra.mxu0 %v78_v60  ;;  %599 = vmatmul.f32.vlgmr.msra.gmra.mxu1 %v78_v60 }
 0x162   :  { %613 = sbr.rel (%p749_p0) target bundleno = 365 (0x16d), region = 17 }
 0x163   :  { %v1684_v24 = vpop.f32.mrf.mxu0  ;;  %v1686_v52 = vpop.f32.mrf.mxu1 }
 0x165   :  { %v1688_v47 = vpop.f32.mrf.mxu2 }
 0x166   :  { %v1690_v27 = vpop.f32.mrf.mxu3 }
 0x167   :  { %v614_v62 = vmul.f32 32.0, %v1684_v24  ;;  %v615_v1 = vmul.f32 32.0, %v1686_v52  ;;  %v616_v25 = vmul.f32 32.0, %v1688_v47  ;;  %v617_v23 = vmul.f32 32.0, %v1690_v27 }
 0x169   :  { %618 = vst [vmem:[%s1777_s4] sm:$0xff] %v614_v62 }
 0x16a   :  { %619 = vst [vmem:[%s1777_s4 + $0x8] sm:$0xff] %v615_v1 }
 0x16b   :  { %620 = vst [vmem:[%s1777_s4 + $0x10] sm:$0xff] %v616_v25 }
 0x16c   :  { %621 = vst [vmem:[%s1777_s4 + $0x18] sm:$0xff] %v617_v23 }
 0x16d PF:  { %p750_p1 = scmp.eq.s32.totalorder %s1775_s0, 0 }
 0x16f   :  { %625 = sbr.rel (%p750_p1) target bundleno = 503 (0x1f7), region = 21 }
 0x174   :  { %v721_v6 = vld [vmem:[%s1776_s3] sm:$0xff]  ;;  %v875_v44 = vmov 0   ;;  %v722_v35 = vld [vmem:[%s1776_s3 + $0x8] sm:$0xff]  ;;  %v626_v37 = vmul.f32 %v1684_v24, %v1684_v24  ;;  %v627_v2 = vmul.f32 %v1686_v52, %v1686_v52  ;;  %v628_v56 = vmul.f32 %v1688_v47, %v1688_v47 }
 0x175   :  { %866 = vset.pattern.permute.xlu0 %v875_v44  ;;  %v629_v22 = vmul.f32 %v1690_v27, %v1690_v27  ;;  %v714_v17 = vlaneseq  ;;  %v686_v42 = vmul.f32 0.87758255, %v1684_v24  ;;  %v687_v19 = vmul.f32 0.87758255, %v1686_v52 }
 0x176   :  { %724 = vperm.xlu0 %866, %v721_v6   ;;  %v630_v16 = vsub.f32 1.0, %v626_v37  ;;  %v631_v9 = vsub.f32 1.0, %v627_v2  ;;  %v632_v36 = vsub.f32 1.0, %v628_v56  ;;  %v751_v5 = vadd.f32 0.87758255, %v1684_v24 }
 0x177   :  { %v633_v13 = vsub.f32 1.0, %v629_v22  ;;  %v752_v60 = vadd.f32 0.87758255, %v1686_v52  ;;  %v715_v62 = vand.u32 127, %v714_v17  ;;  %v756_v2 = vadd.f32 -0.23971277, %v1686_v52 }
 0x178   :  { %v634_v49 = vmax.f32 %v630_v16, 0.0  ;;  %v635_v26 = vmax.f32 %v631_v9, 0.0  ;;  %v1728_v15 = vmax.f32 %v632_v36, 0.0  ;;  %vm702_vm14 = vcmp.gt.f32.partialorder %v751_v5, 0.0 }
 0x179   :  { %v1730_v48 = vmax.f32 %v633_v13, 0.0  ;;  %vm703_vm15 = vcmp.gt.f32.partialorder %v752_v60, 0.0  ;;  %v689_v36 = vmul.f32 0.87758255, %v1690_v27 }
 0x17a   :  { %867 = vrsqrt.f32 %v634_v49  ;;  %vm645_vm6 = vcmp.eq.f32.partialorder %v634_v49, inf  ;;  %vm657_vm7 = vcmp.eq.f32.partialorder %v635_v26, inf  ;;  %v648_v39 = vand.u32 2147483648, %v634_v49 }
 0x17b   :  { %869 = vrsqrt.f32 %v635_v26  ;;  %vm647_vm8 = vcmp.eq.f32.partialorder %v634_v49, 0.0  ;;  %v660_v14 = vand.u32 2147483648, %v635_v26  ;;  %vm659_vm9 = vcmp.eq.f32.partialorder %v635_v26, 0.0 }
 0x17c   :  { %871 = vrsqrt.f32 %v1728_v15  ;;  %vm669_vm10 = vcmp.eq.f32.partialorder %v1728_v15, inf  ;;  %vm681_vm11 = vcmp.eq.f32.partialorder %v1730_v48, inf  ;;  %v672_v1 = vand.u32 2147483648, %v1728_v15 }
 0x17d   :  { %873 = vrsqrt.f32 %v1730_v48  ;;  %v684_v25 = vand.u32 2147483648, %v1730_v48  ;;  %vm671_vm12 = vcmp.eq.f32.partialorder %v1728_v15, 0.0  ;;  %vm683_vm13 = vcmp.eq.f32.partialorder %v1730_v48, 0.0 }
 0x17e   :  { %727 = vperm.xlu0 %866, %v722_v35   ;;  %v755_v35 = vadd.f32 -0.23971277, %v1684_v24 }
 0x180   :  { %v868_v28 = vpop.eup %867 }
 0x181   :  { %v870_v63 = vpop.eup %869  ;;  %v639_v61 = vmul.f32 %v868_v28, %v634_v49 }
 0x182   :  { %v651_v4 = vmul.f32 %v870_v63, %v635_v26  ;;  %v872_v29 = vpop.eup %871 }
 0x183   :  { %v640_v3 = vmul.f32 %v868_v28, %v639_v61  ;;  %v874_v8 = vpop.eup %873  ;;  %v663_v57 = vmul.f32 %v872_v29, %v1728_v15 }
 0x184   :  { %v652_v50 = vmul.f32 %v870_v63, %v651_v4  ;;  %v675_v59 = vmul.f32 %v874_v8, %v1730_v48 }
 0x185   :  { %v641_v21 = vmul.f32 0.5, %v640_v3  ;;  %v664_v55 = vmul.f32 %v872_v29, %v663_v57  ;;  %v757_v3 = vadd.f32 -0.23971277, %v1688_v47 }
 0x186   :  { %v653_v18 = vmul.f32 0.5, %v652_v50  ;;  %v676_v53 = vmul.f32 %v874_v8, %v675_v59 }
 0x187   :  { %v642_v38 = vsub.f32 1.5, %v641_v21  ;;  %v665_v0 = vmul.f32 0.5, %v664_v55 }
 0x188   :  { %v654_v51 = vsub.f32 1.5, %v653_v18  ;;  %v677_v31 = vmul.f32 0.5, %v676_v53 }
 0x189   :  { %v643_v33 = vmul.f32 %v868_v28, %v642_v38  ;;  %v666_v30 = vsub.f32 1.5, %v665_v0  ;;  %v753_v28 = vadd.f32 0.87758255, %v1688_v47 }
 0x18a   :  { %v655_v20 = vmul.f32 %v870_v63, %v654_v51  ;;  %v678_v12 = vsub.f32 1.5, %v677_v31  ;;  %v754_v63 = vadd.f32 0.87758255, %v1690_v27 }
 0x18b   :  { %v644_v46 = vmul.f32 %v643_v33, %v634_v49  ;;  %v667_v45 = vmul.f32 %v872_v29, %v666_v30  ;;  %v758_v29 = vadd.f32 -0.23971277, %v1690_v27  ;;  %vm704_vm2 = vcmp.gt.f32.partialorder %v753_v28, 0.0 }
 0x18c   :  { %v656_v7 = vmul.f32 %v655_v20, %v635_v26  ;;  %v679_v34 = vmul.f32 %v874_v8, %v678_v12  ;;  %vm705_vm3 = vcmp.gt.f32.partialorder %v754_v63, 0.0 }
 0x18d   :  { %v646_v40 = vsel %vm645_vm6, %v634_v49, %v644_v46  ;;  %v668_v58 = vmul.f32 %v667_v45, %v1728_v15  ;;  %v716_v49 = vadd.s32 128, %v715_v62 }
 0x18e   :  { %v658_v41 = vsel %vm657_vm7, %v635_v26, %v656_v7  ;;  %v649_v54 = vsel %vm647_vm8, %v648_v39, %v646_v40  ;;  %v680_v43 = vmul.f32 %v679_v34, %v1730_v48  ;;  %v688_v26 = vmul.f32 0.87758255, %v1688_v47 }
 0x18f   :  { %v661_v10 = vsel %vm659_vm9, %v660_v14, %v658_v41  ;;  %v690_v11 = vmul.f32 0.47942555, %v649_v54  ;;  %v670_v23 = vsel %vm669_vm10, %v1728_v15, %v668_v58 }
 0x190   :  { %v691_v32 = vmul.f32 0.47942555, %v661_v10  ;;  %v682_v6 = vsel %vm681_vm11, %v1730_v48, %v680_v43  ;;  %v673_v16 = vsel %vm671_vm12, %v672_v1, %v670_v23 }
 0x191   :  { %v694_v44 = vsub.f32 %v686_v42, %v690_v11  ;;  %v685_v9 = vsel %vm683_vm13, %v684_v25, %v682_v6  ;;  %v692_v13 = vmul.f32 0.47942555, %v673_v16 }
 0x192   :  { %v695_v37 = vsub.f32 %v687_v19, %v691_v32  ;;  %v693_v15 = vmul.f32 0.47942555, %v685_v9 }
 0x193   :  { %v710_v56 = vsel %vm702_vm14, %v694_v44, %v755_v35  ;;  %v696_v21 = vsub.f32 %v688_v26, %v692_v13 }
 0x194   :  { %v711_v22 = vsel %vm703_vm15, %v695_v37, %v756_v2  ;;  %v697_v18 = vsub.f32 %v689_v36, %v693_v15 }
 0x1e8   :  { %v725_v48 = vpop.permute.xlu0 %724 }
 0x1e9   :  { %vm729_vm0 = vcmp.eq.s32.totalorder %v715_v62, %v725_v48  ;;  %vm730_vm1 = vcmp.eq.s32.totalorder %v716_v49, %v725_v48 }
 0x1ea   :  { %v733_v61 = vsel %vm729_vm0, %v710_v56, %v1684_v24  ;;  %v734_v4 = vsel %vm730_vm1, %v711_v22, %v1686_v52  ;;  %v712_v24 = vsel %vm704_vm2, %v696_v21, %v757_v3  ;;  %v713_v52 = vsel %vm705_vm3, %v697_v18, %v758_v29 }
 0x1eb   :  { %v737_v50 = vmul.f32 32.0, %v733_v61  ;;  %v738_v8 = vmul.f32 32.0, %v734_v4 }
 0x1ed   :  { %741 = vst [vmem:[%s1777_s4] sm:$0xff] %v737_v50 }
 0x1ee   :  { %742 = vst [vmem:[%s1777_s4 + $0x8] sm:$0xff] %v738_v8 }
 0x1f0   :  { %v728_v57 = vpop.permute.xlu0 %727 }
 0x1f1   :  { %vm731_vm4 = vcmp.eq.s32.totalorder %v715_v62, %v728_v57  ;;  %vm732_vm5 = vcmp.eq.s32.totalorder %v716_v49, %v728_v57 }
 0x1f2   :  { %v735_v59 = vsel %vm731_vm4, %v712_v24, %v1688_v47  ;;  %v736_v38 = vsel %vm732_vm5, %v713_v52, %v1690_v27 }
 0x1f3   :  { %v739_v51 = vmul.f32 32.0, %v735_v59  ;;  %v740_v55 = vmul.f32 32.0, %v736_v38 }
 0x1f5   :  { %743 = vst [vmem:[%s1777_s4 + $0x10] sm:$0xff] %v739_v51 }
 0x1f6   :  { %744 = vst [vmem:[%s1777_s4 + $0x18] sm:$0xff] %v740_v55 }
 0x1f7 PF:  {}

</bundles_post_ra>
